<compile_context>
chip_gen: v6e
topology: v6e:2x2x1
jax: 0.10.0
libtpu: 0.0.40
codegen_flags: <defaults>
</compile_context>

<pallas_src>
import jax
import jax.numpy as jnp
from jax.experimental import pallas as pl
from jax.experimental.pallas import tpu as pltpu


# ----------------------------------------------------------------------------
# Kernel: one MXU matmul + bias add + single full-block store.
# Packed path:   x_ref (bt, tn*d_in)  w_ref (tn*d_in, tn*d_out)  b_ref (1, tn*d_out)
# Fallback path: x_ref (bt, d_in)     w_ref (d_in, d_out)        b_ref (1, d_out)
# ----------------------------------------------------------------------------
def _nlinear_kernel(x_ref, w_ref, b_ref, o_ref):
    acc = jnp.dot(x_ref[...], w_ref[...], preferred_element_type=jnp.float32)
    o_ref[...] = (acc + b_ref[...].astype(jnp.float32)).astype(o_ref.dtype)


# ----------------------------------------------------------------------------
# Helpers
# ----------------------------------------------------------------------------
def _round_up(v, m):
    return ((v + m - 1) // m) * m


def _vmem_capacity_bytes():
    """Per-core VMEM capacity; conservative fallback = v7x 64 MiB."""
    try:
        return int(pltpu.get_tpu_info().vmem_capacity_bytes)
    except Exception:
        return 64 * 1024 * 1024


def _choose_layer_pack(n, d_in, d_out, w_itemsize,
                       max_wblock_bytes=4 << 20, max_wbd_bytes=128 << 20):
    """Layers packed per block-diagonal matmul.

    tn must divide n.  If there is more than one layer block, the packed lane
    widths (tn*d_in, tn*d_out) must be multiples of 128 so interior 2-D blocks
    stay lane-aligned.  Among valid candidates prefer filling the MXU
    contraction (up to 256) and the output lanes (up to 128), then the smallest
    tn (least zero-padding flops / packed-weight bytes).  Returns None when no
    packing is feasible (fallback path is used instead).
    """
    best, best_key = None, None
    for tn in range(1, n + 1):
        if n % tn:
            continue
        n_blocks = n // tn
        if n_blocks > 1 and ((tn * d_in) % 128 or (tn * d_out) % 128):
            continue
        if tn * d_in * tn * d_out * w_itemsize > max_wblock_bytes:
            continue
        if n * tn * d_in * d_out * w_itemsize > max_wbd_bytes:
            continue
        key = (min(tn * d_in, 256), min(tn * d_out, 128), -tn)
        if best_key is None or key > best_key:
            best, best_key = tn, key
    return best


def _fit_batch_tile(b_tile, B, sub, per_row_bytes, fixed_bytes, budget_bytes):
    """Batch rows per grid step: multiple of the dtype sublane pack, shrunk
    (halved) until the double-buffered working set fits the VMEM budget."""
    bt = max(sub, _round_up(min(b_tile, B), sub))
    while bt > sub and 2 * (bt * per_row_bytes + fixed_bytes) > budget_bytes:
        bt = max(sub, _round_up(bt // 2, sub))
    return bt


# ----------------------------------------------------------------------------
# Wrapper
# ----------------------------------------------------------------------------
def nlinear(x, weight, bias, *, b_tile=1024):
    """x: (B, n, d_in), weight: (n, d_in, d_out), bias: (n, d_out) -> (B, n, d_out)."""
    assert x.ndim == 3
    B, n, d_in = x.shape
    assert weight.ndim == 3 and weight.shape[0] == n and weight.shape[1] == d_in
    d_out = weight.shape[-1]
    assert bias.shape == (n, d_out)

    out_dtype = x.dtype
    xsz = x.dtype.itemsize
    wsz = weight.dtype.itemsize
    # Sub-32-bit dtypes pack along sublanes: batch (second-minor) block dim must
    # be a multiple of 8 (f32) / 16 (bf16) / 32 (int8, fp8).
    sub = {4: 8, 2: 16, 1: 32}.get(xsz, 8)

    # Generation-aware VMEM budget (v5e/v6e: 128 MiB -> ~96 MiB limit;
    # v7x: 64 MiB -> 48 MiB limit with headroom for the pipeline).
    vmem_cap = _vmem_capacity_bytes()
    vmem_limit = int(min(0.75 * vmem_cap, vmem_cap - (16 << 20)))
    block_budget = int(0.55 * vmem_limit)

    tn = _choose_layer_pack(n, d_in, d_out, wsz)

    cost = dict(flops=2 * B * n * d_in * d_out, transcendentals=0)

    if tn is not None:
        # ------------------------- packed (block-diagonal) path -------------------------
        n_blocks = n // tn
        L_in, L_out = tn * d_in, tn * d_out

        # Block-diagonal packed weights: (n_blocks, tn*d_in, tn*d_out).
        # W_bd[g, t*d_in + i, s*d_out + o] = weight[g*tn + t, i, o] * delta(t, s)
        # (In a real model this would be precomputed once, outside the forward.)
        wb = weight.reshape(n_blocks, tn, d_in, d_out)
        eye = jnp.eye(tn, dtype=weight.dtype)
        w_bd = jnp.einsum("gtio,ts->gtiso", wb, eye).reshape(n_blocks, L_in, L_out)
        b2 = bias.reshape(n_blocks, L_out)

        # Lane-dense 2-D slabs (contiguous row-major views — no data movement).
        x2 = x.reshape(B, n * d_in)

        per_row = (L_in + L_out) * xsz
        fixed = L_in * L_out * wsz + L_out * bias.dtype.itemsize
        bt = _fit_batch_tile(b_tile, B, sub, per_row, fixed, block_budget)
        b_blocks = pl.cdiv(B, bt)

        # Leading parallel axis should have >=2 blocks where possible (v7x, 2 TCs).
        # Weight/bias block index depends only on the layer axis, so its DMA is
        # skipped across consecutive batch steps.
        if n_blocks >= 2:
            grid = (n_blocks, b_blocks)
            x_map = lambda g, b: (b, g)
            w_map = lambda g, b: (g, 0, 0)
            s_map = lambda g, b: (g, 0)
        else:
            grid = (b_blocks, n_blocks)
            x_map = lambda b, g: (b, g)
            w_map = lambda b, g: (g, 0, 0)
            s_map = lambda b, g: (g, 0)

        bytes_accessed = int(x2.size * xsz + w_bd.size * wsz + b2.size * bias.dtype.itemsize
                             + B * n * d_out * out_dtype.itemsize)

        out2 = pl.pallas_call(
            _nlinear_kernel,
            out_shape=jax.ShapeDtypeStruct((B, n * d_out), out_dtype),
            grid=grid,
            in_specs=[
                pl.BlockSpec((bt, L_in), x_map),
                pl.BlockSpec((None, L_in, L_out), w_map),   # leading dim squeezed
                pl.BlockSpec((1, L_out), s_map),
            ],
            out_specs=pl.BlockSpec((bt, L_out), x_map),
            compiler_params=pltpu.CompilerParams(
                dimension_semantics=("parallel", "parallel"),
                vmem_limit_bytes=vmem_limit),
            cost_estimate=pl.CostEstimate(bytes_accessed=bytes_accessed, **cost),
        )(x2, w_bd, b2)
        return out2.reshape(B, n, d_out)

    # ---------------------------- fallback (per-layer) path ----------------------------
    # d_in / d_out are large or 128-unaligned: the MXU and the output lanes are
    # already dense with a single layer per step, so no packing is needed.
    per_row = (d_in + d_out) * xsz
    fixed = d_in * d_out * wsz + d_out * bias.dtype.itemsize
    bt = _fit_batch_tile(b_tile, B, sub, per_row, fixed, block_budget)
    b_blocks = pl.cdiv(B, bt)

    if n >= 2:
        grid = (n, b_blocks)
        x_map = lambda g, b: (b, g, 0)
        w_map = lambda g, b: (g, 0, 0)
        s_map = lambda g, b: (g, 0)
    else:
        grid = (b_blocks, n)
        x_map = lambda b, g: (b, g, 0)
        w_map = lambda b, g: (g, 0, 0)
        s_map = lambda b, g: (g, 0)

    bytes_accessed = int(x.size * xsz + weight.size * wsz + bias.size * bias.dtype.itemsize
                         + B * n * d_out * out_dtype.itemsize)

    return pl.pallas_call(
        _nlinear_kernel,
        out_shape=jax.ShapeDtypeStruct((B, n, d_out), out_dtype),
        grid=grid,
        in_specs=[
            pl.BlockSpec((bt, None, d_in), x_map),      # layer dim squeezed
            pl.BlockSpec((None, d_in, d_out), w_map),   # layer dim squeezed
            pl.BlockSpec((1, d_out), s_map),
        ],
        out_specs=pl.BlockSpec((bt, None, d_out), x_map),
        compiler_params=pltpu.CompilerParams(
            dimension_semantics=("parallel", "parallel"),
            vmem_limit_bytes=vmem_limit),
        cost_estimate=pl.CostEstimate(bytes_accessed=bytes_accessed, **cost),
    )(x, weight, bias)


def init_nlinear_params(key, n, in_features, out_features, dtype=jnp.float32):
    """Matches _NLinear.reset_parameters: U(-d_in^-0.5, d_in^-0.5)."""
    d_in_rsqrt = in_features ** -0.5
    kw, kb = jax.random.split(key)
    weight = jax.random.uniform(
        kw, (n, in_features, out_features), dtype=dtype,
        minval=-d_in_rsqrt, maxval=d_in_rsqrt)
    bias = jax.random.uniform(
        kb, (n, out_features), dtype=dtype,
        minval=-d_in_rsqrt, maxval=d_in_rsqrt)
    return weight, bias


if __name__ == "__main__":
    key = jax.random.PRNGKey(0)
    kx, kp = jax.random.split(key)

    # --- Packed (block-diagonal) path: small per-feature dims, ragged batch grid ---
    B, n, d_in, d_out = 200, 12, 16, 24
    x = jax.random.normal(kx, (B, n, d_in), dtype=jnp.float32)
    weight, bias = init_nlinear_params(kp, n, d_in, d_out)
    # Small batch tile so the demo exercises a multi-step grid with a ragged last block.
    out = nlinear(x, weight, bias, b_tile=64)
    jax.block_until_ready(out)
    ref = jnp.einsum("bni,nio->bno", x, weight) + bias[None, :, :]
    assert out.shape == (B, n, d_out)
    assert jnp.allclose(out, ref, atol=1e-5, rtol=1e-5)

    # --- Fallback (per-layer) path: dims too large / unaligned to pack ---
    B2, n2, di2, do2 = 40, 7, 300, 260
    kx2, kp2 = jax.random.split(kp)
    x2 = jax.random.normal(kx2, (B2, n2, di2), dtype=jnp.float32)
    w2, b2 = init_nlinear_params(kp2, n2, di2, do2)
    out2 = nlinear(x2, w2, b2)
    jax.block_until_ready(out2)
    ref2 = jnp.einsum("bni,nio->bno", x2, w2) + b2[None, :, :]
    assert out2.shape == (B2, n2, do2)
    assert jnp.allclose(out2, ref2, atol=1e-4, rtol=1e-4)

    print("KERNEL_OK")
</pallas_src>

<mosaic_0001>
module attributes {stable_mosaic.version = 11 : i64} {
  func.func @_nlinear_kernel(%arg0: i32, %arg1: i32, %arg2: memref<64x192xf32, #tpu.memory_space<vmem>>, %arg3: memref<1x192x288xf32, #tpu.memory_space<vmem>>, %arg4: memref<1x288xf32, #tpu.memory_space<vmem>>, %arg5: memref<64x288xf32, #tpu.memory_space<vmem>>) attributes {dimension_semantics = [#tpu.dimension_semantics<parallel>, #tpu.dimension_semantics<parallel>], iteration_bounds = array<i64: 4, 1>, scalar_prefetch = 0 : i64, scratch_operands = 0 : i64, tpu.core_type = #tpu.core_type<tc>, window_params = [{transform_indices = @transform_0, window_bounds = array<i64: 64, 192>}, {transform_indices = @transform_1, window_bounds = array<i64: 1, 192, 288>}, {transform_indices = @transform_2, window_bounds = array<i64: 1, 288>}, {transform_indices = @transform_3, window_bounds = array<i64: 64, 288>}]} {
    %c0 = arith.constant 0 : index
    %c0_0 = arith.constant 0 : index
    %0 = vector.load %arg2[%c0, %c0_0] : memref<64x192xf32, #tpu.memory_space<vmem>>, vector<64x192xf32>
    %c0_1 = arith.constant 0 : index
    %c0_2 = arith.constant 0 : index
    %c0_3 = arith.constant 0 : index
    %1 = vector.load %arg3[%c0_1, %c0_2, %c0_3] : memref<1x192x288xf32, #tpu.memory_space<vmem>>, vector<1x192x288xf32>
    %2 = vector.shape_cast %1 : vector<1x192x288xf32> to vector<192x288xf32>
    %cst = arith.constant dense<0.000000e+00> : vector<64x288xf32>
    %3 = tpu.matmul %0, %2, %cst {dimension_numbers = #tpu.dot_dimension_numbers<[1], [0], [0], [1], [0, 0, 1, 1], [], []>} : vector<64x192xf32>, vector<192x288xf32>, vector<64x288xf32> -> vector<64x288xf32>
    %c0_4 = arith.constant 0 : index
    %c0_5 = arith.constant 0 : index
    %4 = vector.load %arg4[%c0_4, %c0_5] : memref<1x288xf32, #tpu.memory_space<vmem>>, vector<1x288xf32>
    %5 = vector.broadcast %4 : vector<1x288xf32> to vector<64x288xf32>
    %6 = arith.addf %3, %5 : vector<64x288xf32>
    %c0_6 = arith.constant 0 : index
    %c0_7 = arith.constant 0 : index
    %7 = vector.load %arg5[%c0_6, %c0_7] : memref<64x288xf32, #tpu.memory_space<vmem>>, vector<64x288xf32>
    tpu.vector_store %arg5[%c0_6, %c0_7], %6 {strides = array<i32>} : memref<64x288xf32, #tpu.memory_space<vmem>>, vector<64x288xf32>,
    return
  }
  func.func @transform_0(%arg0: i32, %arg1: i32) -> (i32, i32) {
    %c0_i32 = arith.constant 0 : i32
    return %arg0, %arg1 : i32, i32
  }
  func.func @transform_1(%arg0: i32, %arg1: i32) -> (i32, i32, i32) {
    %c0_i32 = arith.constant 0 : i32
    %c0_i32_0 = arith.constant 0 : i32
    %c0_i32_1 = arith.constant 0 : i32
    return %arg1, %c0_i32, %c0_i32_0 : i32, i32, i32
  }
  func.func @transform_2(%arg0: i32, %arg1: i32) -> (i32, i32) {
    %c0_i32 = arith.constant 0 : i32
    %c0_i32_0 = arith.constant 0 : i32
    return %arg1, %c0_i32 : i32, i32
  }
  func.func @transform_3(%arg0: i32, %arg1: i32) -> (i32, i32) {
    %c0_i32 = arith.constant 0 : i32
    return %arg0, %arg1 : i32, i32
  }
}

</mosaic_0001>

<bundles_post_ra>
// kernel: tpu_custom_call.1
= control target key start
LH: loop header
LB: loop body
LE: loop exit
PB: predicated region body
PF: predicated region fallthrough
CT: control target
= control target key end

     0   :  { %s1170_s12 = smov 0   ;;  %s1172_s13 = smov 0   ;;  %s1698_s0 = inlined_call_operand.vmem [shape: f32[200,192], index: 0, kind: input, shape index: {}]   ;;  %s1699_s1 = inlined_call_operand.vmem [shape: f32[1,192,288], index: 1, kind: input, shape index: {}]   ;;  %s1700_s2 = inlined_call_operand.vmem [shape: f32[1,288], index: 2, kind: input, shape index: {}]   ;;  %s1701_s3 = inlined_call_operand.vmem [shape: f32[200,288], index: 3, kind: output, shape index: {}]  }
   0x1   :  { %s1174_s14 = smov 0   ;;  %s1176_s15 = smov 0  }
   0x2   :  { %s1178_s16 = smov 0  }
   0x3 LB: > { %s897_s17 = sadd.s32 4294967295, %s1115_s16   ;;  %s25_s18 = sadd.s32 1, %s1111_s15  ;;  %s1115_s16 = sphi %s1178_s16, %s13_s16   ;;  %s1111_s15 = sphi %s1176_s15, %s1710_s15   ;;  %s1107_s14 = sphi %s1174_s14, %s1709_s14   ;;  %s1103_s13 = sphi %s1172_s13, %s1708_s13   ;;  %s1099_s12 = sphi %s1170_s12, %s1707_s12  }
   0x4   : > { %p27_p0 = scmp.ge.s32.totalorder %s25_s18, 4  ;;  %s114_s19 = sadd.s32 1, %s1103_s13 }
   0x5   : > { %p124_p1 = scmp.ne.s32.totalorder %s1103_s13, %s1099_s12  ;;  %p125_p2 = scmp.eq.s32.totalorder %s897_s17, 3 }
   0x6   : > { %s1712_s18 = smov (%p27_p0, %s25_s18), 0  ;;  %p903_p4 = scmp.ge.s32.totalorder %s1115_s16, 1 }
   0x7   : > { %p1202_p3 = por %p125_p2, %p124_p1  ;;  %s109_s21 = ssub.s32 %s1111_s15, %s1712_s18 }
   0x8   : > { %p189_p5 = scmp.lt.s32.totalorder %s1115_s16, 5  ;;  %p112_p6 = scmp.eq.s32.totalorder %s109_s21, 0 }
   0xa   : > { %p190_p7 = pnand %p903_p4, %p189_p5 }
   0xb   : > { %s1211_s22 = scalar_select %p112_p6, %s1103_s13, %s114_s19  }
   0xc   : > { %193 = sbr.rel (%p190_p7) target bundleno = 337 (0x151), region = 32  ;;  %s1366_s17 = sshll.u32 (!%p190_p7), %s1107_s14, 3 }
   0xd   : > { %p238_p8 = scmp.lt.s32.totalorder (!%p190_p7), %s1366_s17, 24  ;;  %s228_s24 = sand.u32 (!%p190_p7), 1, %s1099_s12  }
  0x11   : > { %v331_v0 = vld [vmem:[%s1699_s1 + $0x170] sm:$0xff]  ;;  %v330_v1 = vld [vmem:[%s1699_s1 + $0x168] sm:$0xff]  ;;  %v332_v2 = vld [vmem:[%s1699_s1 + $0x178] sm:$0xff]  ;;  %v1149_v3 = vmov 0.0   ;;  %s239_s25 = scalar_select %p238_p8, %s1366_s17, 24  ;;  %vm374_vm0 = vcmask 523264  }
  0x12   : > { %399 = vmatprep.subr.mxu0 %v331_v0  ;;  %512 = vmatprep.subr.mxu1 %v1149_v3  ;;  %v328_v4 = vld [vmem:[%s1699_s1 + $0x158] sm:$0xff]  ;;  %v327_v5 = vld [vmem:[%s1699_s1 + $0x150] sm:$0xff]  ;;  %v329_v6 = vld [vmem:[%s1699_s1 + $0x160] sm:$0xff]  ;;  %vm619_vm1 = vcmask 261120   ;;  %s651_s28 = ssub.s32 (%p1202_p3), 25, %s1366_s17  ;;  %s939_s29 = smul.u32 (%p1202_p3), 192, %s1107_s14 }
  0x13   : > { %400 = vmatpush1.msra.mxu0 %v330_v1  ;;  %513 = vmatpush1.msra.mxu1 %v332_v2  ;;  %v325_v7 = vld [vmem:[%s1699_s1 + $0x140] sm:$0xff]  ;;  %v324_v8 = vld [vmem:[%s1699_s1 + $0x138] sm:$0xff]  ;;  %v326_v9 = vld [vmem:[%s1699_s1 + $0x148] sm:$0xff]  ;;  %s937_s11 = sshll.u32 %s239_s25, 4  ;;  %s938_s25 = smul.u32 192, %s228_s24 }
  0x14   : > { %401 = vmatprep.subr.mxu0 %v328_v4  ;;  %514 = vmatprep.subr.mxu1 %v1149_v3  ;;  %v322_v10 = vld [vmem:[%s1699_s1 + $0x128] sm:$0xff]  ;;  %v321_v11 = vld [vmem:[%s1699_s1 + $0x120] sm:$0xff]  ;;  %v323_v12 = vld [vmem:[%s1699_s1 + $0x130] sm:$0xff]  ;;  %s1445_s4 = scalar_lea.vmem %s1698_s0, %s937_s11  ;;  %p652_p9 = scmp.lt.s32.totalorder (%p1202_p3), %s651_s28, 8 }
  0x15   : > { %402 = vmatpush1.msra.mxu0 %v327_v5  ;;  %515 = vmatpush1.msra.mxu1 %v329_v6  ;;  %v319_v13 = vld [vmem:[%s1699_s1 + $0x110] sm:$0xff]  ;;  %v318_v14 = vld [vmem:[%s1699_s1 + $0x108] sm:$0xff]  ;;  %v320_v15 = vld [vmem:[%s1699_s1 + $0x118] sm:$0xff]  ;;  %s1509_s12 = scalar_lea.vmem [#allocation2], %s938_s25   ;;  %s1572_s5 = scalar_lea.vmem (%p1202_p3), %s1701_s3, %s939_s29  }
  0x16   : > { %403 = vmatprep.subr.mxu0 %v325_v7  ;;  %516 = vmatprep.subr.mxu1 %v1149_v3  ;;  %v316_v16 = vld [vmem:[%s1699_s1 + $0xf8] sm:$0xff]  ;;  %v315_v17 = vld [vmem:[%s1699_s1 + $0xf0] sm:$0xff]  ;;  %v317_v18 = vld [vmem:[%s1699_s1 + $0x100] sm:$0xff] }
  0x17   : > { %404 = vmatpush1.msra.mxu0 %v324_v8  ;;  %517 = vmatpush1.msra.mxu1 %v326_v9  ;;  %v313_v19 = vld [vmem:[%s1699_s1 + $0xe0] sm:$0xff]  ;;  %v312_v20 = vld [vmem:[%s1699_s1 + $0xd8] sm:$0xff]  ;;  %v314_v21 = vld [vmem:[%s1699_s1 + $0xe8] sm:$0xff] }
  0x18   : > { %405 = vmatprep.subr.mxu0 %v322_v10  ;;  %518 = vmatprep.subr.mxu1 %v1149_v3  ;;  %v310_v22 = vld [vmem:[%s1699_s1 + $0xc8] sm:$0xff]  ;;  %v309_v23 = vld [vmem:[%s1699_s1 + $0xc0] sm:$0xff]  ;;  %v311_v24 = vld [vmem:[%s1699_s1 + $0xd0] sm:$0xff] }
  0x19   : > { %406 = vmatpush1.msra.mxu0 %v321_v11  ;;  %519 = vmatpush1.msra.mxu1 %v323_v12  ;;  %v307_v25 = vld [vmem:[%s1699_s1 + $0xb0] sm:$0xff]  ;;  %v306_v26 = vld [vmem:[%s1699_s1 + $0xa8] sm:$0xff]  ;;  %v308_v27 = vld [vmem:[%s1699_s1 + $0xb8] sm:$0xff] }
  0x1a   : > { %407 = vmatprep.subr.mxu0 %v319_v13  ;;  %520 = vmatprep.subr.mxu1 %v1149_v3  ;;  %v304_v28 = vld [vmem:[%s1699_s1 + $0x98] sm:$0xff]  ;;  %v303_v29 = vld [vmem:[%s1699_s1 + $0x90] sm:$0xff]  ;;  %v305_v30 = vld [vmem:[%s1699_s1 + $0xa0] sm:$0xff] }
  0x1b   : > { %408 = vmatpush1.msra.mxu0 %v318_v14  ;;  %521 = vmatpush1.msra.mxu1 %v320_v15  ;;  %v301_v31 = vld [vmem:[%s1699_s1 + $0x80] sm:$0xff]  ;;  %v300_v32 = vld [vmem:[%s1699_s1 + $0x78] sm:$0xff]  ;;  %v302_v33 = vld [vmem:[%s1699_s1 + $0x88] sm:$0xff] }
  0x1c   : > { %409 = vmatprep.subr.mxu0 %v316_v16  ;;  %522 = vmatprep.subr.mxu1 %v1149_v3  ;;  %v298_v34 = vld [vmem:[%s1699_s1 + $0x68] sm:$0xff]  ;;  %v297_v35 = vld [vmem:[%s1699_s1 + $0x60] sm:$0xff]  ;;  %v299_v36 = vld [vmem:[%s1699_s1 + $0x70] sm:$0xff] }
  0x1d   : > { %410 = vmatpush1.msra.mxu0 %v315_v17  ;;  %523 = vmatpush1.msra.mxu1 %v317_v18  ;;  %v295_v37 = vld [vmem:[%s1699_s1 + $0x50] sm:$0xff]  ;;  %v294_v38 = vld [vmem:[%s1699_s1 + $0x48] sm:$0xff]  ;;  %v296_v39 = vld [vmem:[%s1699_s1 + $0x58] sm:$0xff] }
  0x1e   : > { %411 = vmatprep.subr.mxu0 %v313_v19  ;;  %524 = vmatprep.subr.mxu1 %v1149_v3  ;;  %v292_v40 = vld [vmem:[%s1699_s1 + $0x38] sm:$0xff]  ;;  %v291_v41 = vld [vmem:[%s1699_s1 + $0x30] sm:$0xff]  ;;  %v293_v42 = vld [vmem:[%s1699_s1 + $0x40] sm:$0xff] }
  0x1f   : > { %412 = vmatpush1.msra.mxu0 %v312_v20  ;;  %525 = vmatpush1.msra.mxu1 %v314_v21  ;;  %v289_v43 = vld [vmem:[%s1699_s1 + $0x20] sm:$0xff]  ;;  %v288_v44 = vld [vmem:[%s1699_s1 + $0x18] sm:$0xff]  ;;  %v290_v45 = vld [vmem:[%s1699_s1 + $0x28] sm:$0xff] }
  0x20   : > { %413 = vmatprep.subr.mxu0 %v310_v22  ;;  %526 = vmatprep.subr.mxu1 %v1149_v3  ;;  %v286_v46 = vld [vmem:[%s1699_s1 + $0x8] sm:$0xff]  ;;  %v285_v47 = vld [vmem:[%s1699_s1] sm:$0xff]  ;;  %v287_v48 = vld [vmem:[%s1699_s1 + $0x10] sm:$0xff] }
  0x21   : > { %414 = vmatpush1.msra.mxu0 %v309_v23  ;;  %527 = vmatpush1.msra.mxu1 %v311_v24  ;;  %v355_v49 = vld [vmem:[%s1699_s1 + $0x230] sm:$0xff]  ;;  %v354_v50 = vld [vmem:[%s1699_s1 + $0x228] sm:$0xff]  ;;  %v356_v51 = vld [vmem:[%s1699_s1 + $0x238] sm:$0xff] }
  0x22   : > { %415 = vmatprep.subr.mxu0 %v307_v25  ;;  %528 = vmatprep.subr.mxu1 %v1149_v3  ;;  %v352_v52 = vld [vmem:[%s1699_s1 + $0x218] sm:$0xff]  ;;  %v351_v53 = vld [vmem:[%s1699_s1 + $0x210] sm:$0xff]  ;;  %v353_v54 = vld [vmem:[%s1699_s1 + $0x220] sm:$0xff]  ;;  %v359_v25 = vlaneseq }
  0x23   : > { %416 = vmatpush1.msra.mxu0 %v306_v26  ;;  %529 = vmatpush1.msra.mxu1 %v308_v27  ;;  %v349_v55 = vld [vmem:[%s1699_s1 + $0x200] sm:$0xff]  ;;  %v348_v56 = vld [vmem:[%s1699_s1 + $0x1f8] sm:$0xff]  ;;  %v350_v57 = vld [vmem:[%s1699_s1 + $0x208] sm:$0xff] }
  0x24   : > { %417 = vmatprep.subr.mxu0 %v304_v28  ;;  %530 = vmatprep.subr.mxu1 %v1149_v3  ;;  %v346_v58 = vld [vmem:[%s1699_s1 + $0x1e8] sm:$0xff]  ;;  %v345_v59 = vld [vmem:[%s1699_s1 + $0x1e0] sm:$0xff]  ;;  %v347_v60 = vld [vmem:[%s1699_s1 + $0x1f0] sm:$0xff]  ;;  %v360_v26 = vshrl.u32 %v359_v25, 7 }
  0x25   : > { %418 = vmatpush1.msra.mxu0 %v303_v29  ;;  %531 = vmatpush1.msra.mxu1 %v305_v30  ;;  %v343_v61 = vld [vmem:[%s1699_s1 + $0x1d0] sm:$0xff]  ;;  %v342_v62 = vld [vmem:[%s1699_s1 + $0x1c8] sm:$0xff]  ;;  %v344_v63 = vld [vmem:[%s1699_s1 + $0x1d8] sm:$0xff] }
  0x26   : > { %419 = vmatprep.subr.mxu0 %v301_v31  ;;  %532 = vmatprep.subr.mxu1 %v1149_v3  ;;  %v340_v0 = vld [vmem:[%s1699_s1 + $0x1b8] sm:$0xff]  ;;  %v339_v1 = vld [vmem:[%s1699_s1 + $0x1b0] sm:$0xff]  ;;  %v341_v2 = vld [vmem:[%s1699_s1 + $0x1c0] sm:$0xff]  ;;  %v361_v27 = vsub.s32 0, %v360_v26  ;;  %v369_v28 = vsub.s32 2, %v360_v26  ;;  %v365_v30 = vsub.s32 1, %v360_v26 }
  0x27   : > { %420 = vmatpush1.msra.mxu0 %v300_v32  ;;  %533 = vmatpush1.msra.mxu1 %v302_v33  ;;  %v337_v4 = vld [vmem:[%s1699_s1 + $0x1a0] sm:$0xff]  ;;  %v336_v5 = vld [vmem:[%s1699_s1 + $0x198] sm:$0xff]  ;;  %v338_v6 = vld [vmem:[%s1699_s1 + $0x1a8] sm:$0xff] }
  0x28   : > { %421 = vmatprep.subr.mxu0 %v298_v34  ;;  %534 = vmatprep.subr.mxu1 %v1149_v3  ;;  %v334_v7 = vld [vmem:[%s1699_s1 + $0x188] sm:$0xff]  ;;  %v333_v8 = vld [vmem:[%s1699_s1 + $0x180] sm:$0xff]  ;;  %v335_v10 = vld [vmem:[%s1699_s1 + $0x190] sm:$0xff] }
  0x29   : > { %422 = vmatpush1.msra.mxu0 %v297_v35  ;;  %535 = vmatpush1.msra.mxu1 %v299_v36  ;;  %v270_v9 = vld [vmem:[%s1445_s4 + $0x8] sm:$0xff]  ;;  %v269_v11 = vld [vmem:[%s1445_s4] sm:$0xff]  ;;  %v272_v12 = vld [vmem:[%s1445_s4 + $0x18] sm:$0xff] }
  0x2a   : > { %423 = vmatprep.subr.mxu0 %v295_v37  ;;  %536 = vmatprep.subr.mxu1 %v1149_v3  ;;  %v271_v13 = vld [vmem:[%s1445_s4 + $0x10] sm:$0xff]  ;;  %v273_v14 = vld [vmem:[%s1445_s4 + $0x20] sm:$0xff]  ;;  %v276_v15 = vld [vmem:[%s1445_s4 + $0x38] sm:$0xff] }
  0x2b   : > { %424 = vmatpush1.msra.mxu0 %v294_v38  ;;  %537 = vmatpush1.msra.mxu1 %v296_v39  ;;  %v275_v16 = vld [vmem:[%s1445_s4 + $0x30] sm:$0xff]  ;;  %v278_v17 = vld [vmem:[%s1445_s4 + $0x48] sm:$0xff]  ;;  %v277_v18 = vld [vmem:[%s1445_s4 + $0x40] sm:$0xff] }
  0x2c   : > { %425 = vmatprep.subr.mxu0 %v292_v40  ;;  %538 = vmatprep.subr.mxu1 %v1149_v3  ;;  %v280_v19 = vld [vmem:[%s1445_s4 + $0x58] sm:$0xff]  ;;  %v279_v20 = vld [vmem:[%s1445_s4 + $0x50] sm:$0xff]  ;;  %v282_v21 = vld [vmem:[%s1445_s4 + $0x68] sm:$0xff] }
  0x2d   : > { %426 = vmatpush1.msra.mxu0 %v291_v41  ;;  %539 = vmatpush1.msra.mxu1 %v293_v42  ;;  %v281_v22 = vld [vmem:[%s1445_s4 + $0x60] sm:$0xff]  ;;  %v284_v23 = vld [vmem:[%s1445_s4 + $0x78] sm:$0xff]  ;;  %v283_v24 = vld [vmem:[%s1445_s4 + $0x70] sm:$0xff] }
  0x2e   : > { %427 = vmatprep.subr.mxu0 %v289_v43  ;;  %540 = vmatprep.subr.mxu1 %v1149_v3  ;;  %v357_v29 = vld [vmem:[%s1700_s2] sm:$0x7] }
  0x2f   : > { %428 = vmatpush1.msra.mxu0 %v288_v44  ;;  %541 = vmatpush1.msra.mxu1 %v290_v45  ;;  %v1501_v31 = vrot.slane %v357_v29, %v361_v27  ;;  %v1503_v32 = vrot.slane %v357_v29, %v369_v28  ;;  %v1505_v33 = vrot.slane %v357_v29, %v365_v30 }
  0x30   : > { %429 = vmatprep.subr.mxu0 %v286_v46  ;;  %542 = vmatprep.subr.mxu1 %v1149_v3 }
  0x31   : > { %430 = vmatpush1.msra.mxu0 %v285_v47  ;;  %543 = vmatpush1.msra.mxu1 %v287_v48 }
  0x32   : > { %447 = vmatprep.subr.mxu0 %v355_v49  ;;  %560 = vmatprep.subr.mxu1 %v1149_v3 }
  0x33   : > { %448 = vmatpush2.msra.mxu0 %v354_v50  ;;  %561 = vmatpush2.msra.mxu1 %v356_v51 }
  0x34   : > { %449 = vmatprep.subr.mxu0 %v352_v52  ;;  %562 = vmatprep.subr.mxu1 %v1149_v3 }
  0x35   : > { %450 = vmatpush2.msra.mxu0 %v351_v53  ;;  %563 = vmatpush2.msra.mxu1 %v353_v54 }
  0x36   : > { %451 = vmatprep.subr.mxu0 %v349_v55  ;;  %564 = vmatprep.subr.mxu1 %v1149_v3 }
  0x37   : > { %452 = vmatpush2.msra.mxu0 %v348_v56  ;;  %565 = vmatpush2.msra.mxu1 %v350_v57 }
  0x38   : > { %453 = vmatprep.subr.mxu0 %v346_v58  ;;  %566 = vmatprep.subr.mxu1 %v1149_v3 }
  0x39   : > { %454 = vmatpush2.msra.mxu0 %v345_v59  ;;  %567 = vmatpush2.msra.mxu1 %v347_v60 }
  0x3a   : > { %455 = vmatprep.subr.mxu0 %v343_v61  ;;  %568 = vmatprep.subr.mxu1 %v1149_v3 }
  0x3b   : > { %456 = vmatpush2.msra.mxu0 %v342_v62  ;;  %569 = vmatpush2.msra.mxu1 %v344_v63 }
  0x3c   : > { %457 = vmatprep.subr.mxu0 %v340_v0  ;;  %570 = vmatprep.subr.mxu1 %v1149_v3 }
  0x3d   : > { %458 = vmatpush2.msra.mxu0 %v339_v1  ;;  %571 = vmatpush2.msra.mxu1 %v341_v2 }
  0x3e   : > { %459 = vmatprep.subr.mxu0 %v337_v4  ;;  %572 = vmatprep.subr.mxu1 %v1149_v3 }
  0x3f   : > { %460 = vmatpush2.msra.mxu0 %v336_v5  ;;  %573 = vmatpush2.msra.mxu1 %v338_v6 }
  0x40   : > { %461 = vmatprep.subr.mxu0 %v334_v7  ;;  %574 = vmatprep.subr.mxu1 %v1149_v3  ;;  %v274_v3 = vld [vmem:[%s1445_s4 + $0x28] sm:$0xff] }
  0x41   : > { %462 = vmatpush2.msra.mxu0 %v333_v8  ;;  %907 = vmatprep.mubr.msk.f32.mxu0 %vm374_vm0, %v270_v9 }
  0x42   : > { %575 = vmatpush2.msra.mxu1 %v335_v10  ;;  %915 = vmatprep.mubr.msk.f32.mxu1 %vm374_vm0, %v270_v9 }
  0x43   : > { %464 = vmatmul.mubr.f32.vlgmr.msra.gmra.mxu0 %v269_v11  ;;  %577 = vmatmul.mubr.f32.vlgmr.msra.gmra.mxu1 %v269_v11 }
  0x44   : > { %908 = vmatprep.mubr.msk.f32.mxu0 %vm374_vm0, %v272_v12  ;;  %916 = vmatprep.mubr.msk.f32.mxu1 %vm374_vm0, %v272_v12 }
  0x47   : > { %470 = vmatmul.mubr.f32.gmra.mxu0 %v271_v13  ;;  %582 = vmatmul.mubr.f32.gmra.mxu1 %v271_v13 }
  0x48   : > { %909 = vmatprep.mubr.msk.f32.mxu0 %vm374_vm0, %v274_v3  ;;  %917 = vmatprep.mubr.msk.f32.mxu1 %vm374_vm0, %v274_v3 }
  0x4b   : > { %476 = vmatmul.mubr.f32.gmra.mxu0 %v273_v14  ;;  %587 = vmatmul.mubr.f32.gmra.mxu1 %v273_v14 }
  0x4c   : > { %910 = vmatprep.mubr.msk.f32.mxu0 %vm374_vm0, %v276_v15  ;;  %918 = vmatprep.mubr.msk.f32.mxu1 %vm374_vm0, %v276_v15 }
  0x4f   : > { %482 = vmatmul.mubr.f32.gmra.mxu0 %v275_v16  ;;  %592 = vmatmul.mubr.f32.gmra.mxu1 %v275_v16 }
  0x50   : > { %911 = vmatprep.mubr.msk.f32.mxu0 %vm374_vm0, %v278_v17  ;;  %919 = vmatprep.mubr.msk.f32.mxu1 %vm374_vm0, %v278_v17 }
  0x53   : > { %488 = vmatmul.mubr.f32.gmra.mxu0 %v277_v18  ;;  %597 = vmatmul.mubr.f32.gmra.mxu1 %v277_v18 }
  0x54   : > { %912 = vmatprep.mubr.msk.f32.mxu0 %vm374_vm0, %v280_v19  ;;  %920 = vmatprep.mubr.msk.f32.mxu1 %vm374_vm0, %v280_v19 }
  0x57   : > { %494 = vmatmul.mubr.f32.gmra.mxu0 %v279_v20  ;;  %602 = vmatmul.mubr.f32.gmra.mxu1 %v279_v20 }
  0x58   : > { %913 = vmatprep.mubr.msk.f32.mxu0 %vm374_vm0, %v282_v21  ;;  %921 = vmatprep.mubr.msk.f32.mxu1 %vm374_vm0, %v282_v21 }
  0x5b   : > { %500 = vmatmul.mubr.f32.gmra.mxu0 %v281_v22  ;;  %607 = vmatmul.mubr.f32.gmra.mxu1 %v281_v22 }
  0x5c   : > { %914 = vmatprep.mubr.msk.f32.mxu0 %vm374_vm0, %v284_v23  ;;  %922 = vmatprep.mubr.msk.f32.mxu1 %vm374_vm0, %v284_v23 }
  0x5f   : > { %506 = vmatmul.mubr.f32.gmra.mxu0 %v283_v24  ;;  %612 = vmatmul.mubr.f32.gmra.mxu1 %v283_v24 }
 0x103   : > { %v465_v34 = vpop.f32.mrf.mxu0  ;;  %v578_v35 = vpop.f32.mrf.mxu1 }
 0x104   : > { %v466_v36 = vadd.f32 %v465_v34, %v1501_v31  ;;  %v579_v37 = vadd.f32 %v578_v35, %v1503_v32 }
 0x105   : > { %v467_v38 = vpop.f32.mrf.mxu0  ;;  %v580_v39 = vpop.f32.mrf.mxu1 }
 0x106   : > { %617 = vst [vmem:[%s1509_s12] sm:$0xff] %v466_v36  ;;  %620 = vst.msk [vmem:[%s1509_s12 + $0x10] sm:$0xff] %vm619_vm1, %v579_v37  ;;  %v468_v40 = vadd.f32 %v467_v38, %v1505_v33 }
 0x107   : > { %v471_v41 = vpop.f32.mrf.mxu0  ;;  %v583_v42 = vpop.f32.mrf.mxu1 }
 0x108   : > { %618 = vst [vmem:[%s1509_s12 + $0x8] sm:$0xff] %v468_v40  ;;  %v472_v43 = vadd.f32 %v471_v41, %v1501_v31  ;;  %v584_v44 = vadd.f32 %v583_v42, %v1503_v32 }
 0x109   : > { %v473_v45 = vpop.f32.mrf.mxu0  ;;  %v585_v46 = vpop.f32.mrf.mxu1 }
 0x10a   : > { %621 = vst [vmem:[%s1509_s12 + $0x18] sm:$0xff] %v472_v43  ;;  %623 = vst.msk [vmem:[%s1509_s12 + $0x28] sm:$0xff] %vm619_vm1, %v584_v44  ;;  %v474_v47 = vadd.f32 %v473_v45, %v1505_v33 }
 0x10b   : > { %v477_v48 = vpop.f32.mrf.mxu0  ;;  %v588_v49 = vpop.f32.mrf.mxu1 }
 0x10c   : > { %622 = vst [vmem:[%s1509_s12 + $0x20] sm:$0xff] %v474_v47  ;;  %v478_v50 = vadd.f32 %v477_v48, %v1501_v31  ;;  %v589_v51 = vadd.f32 %v588_v49, %v1503_v32 }
 0x10d   : > { %v479_v52 = vpop.f32.mrf.mxu0  ;;  %v590_v53 = vpop.f32.mrf.mxu1 }
 0x10e   : > { %624 = vst [vmem:[%s1509_s12 + $0x30] sm:$0xff] %v478_v50  ;;  %626 = vst.msk [vmem:[%s1509_s12 + $0x40] sm:$0xff] %vm619_vm1, %v589_v51  ;;  %v480_v54 = vadd.f32 %v479_v52, %v1505_v33 }
 0x10f   : > { %v483_v55 = vpop.f32.mrf.mxu0  ;;  %v593_v56 = vpop.f32.mrf.mxu1 }
 0x110   : > { %625 = vst [vmem:[%s1509_s12 + $0x38] sm:$0xff] %v480_v54  ;;  %v484_v57 = vadd.f32 %v483_v55, %v1501_v31  ;;  %v594_v58 = vadd.f32 %v593_v56, %v1503_v32 }
 0x111   : > { %v485_v59 = vpop.f32.mrf.mxu0  ;;  %v595_v60 = vpop.f32.mrf.mxu1 }
 0x112   : > { %627 = vst [vmem:[%s1509_s12 + $0x48] sm:$0xff] %v484_v57  ;;  %629 = vst.msk [vmem:[%s1509_s12 + $0x58] sm:$0xff] %vm619_vm1, %v594_v58  ;;  %v486_v61 = vadd.f32 %v485_v59, %v1505_v33 }
 0x113   : > { %v489_v62 = vpop.f32.mrf.mxu0  ;;  %v598_v63 = vpop.f32.mrf.mxu1 }
 0x114   : > { %628 = vst [vmem:[%s1509_s12 + $0x50] sm:$0xff] %v486_v61  ;;  %v490_v0 = vadd.f32 %v489_v62, %v1501_v31  ;;  %v599_v1 = vadd.f32 %v598_v63, %v1503_v32 }
 0x115   : > { %v491_v2 = vpop.f32.mrf.mxu0  ;;  %v600_v4 = vpop.f32.mrf.mxu1 }
 0x116   : > { %630 = vst [vmem:[%s1509_s12 + $0x60] sm:$0xff] %v490_v0  ;;  %632 = vst.msk [vmem:[%s1509_s12 + $0x70] sm:$0xff] %vm619_vm1, %v599_v1  ;;  %v492_v5 = vadd.f32 %v491_v2, %v1505_v33 }
 0x117   : > { %v495_v6 = vpop.f32.mrf.mxu0  ;;  %v603_v7 = vpop.f32.mrf.mxu1 }
 0x118   : > { %631 = vst [vmem:[%s1509_s12 + $0x68] sm:$0xff] %v492_v5  ;;  %v496_v8 = vadd.f32 %v495_v6, %v1501_v31  ;;  %v604_v9 = vadd.f32 %v603_v7, %v1503_v32 }
 0x119   : > { %v497_v10 = vpop.f32.mrf.mxu0  ;;  %v605_v11 = vpop.f32.mrf.mxu1 }
 0x11a   : > { %633 = vst [vmem:[%s1509_s12 + $0x78] sm:$0xff] %v496_v8  ;;  %635 = vst.msk [vmem:[%s1509_s12 + $0x88] sm:$0xff] %vm619_vm1, %v604_v9  ;;  %v498_v12 = vadd.f32 %v497_v10, %v1505_v33 }
 0x11b   : > { %v501_v13 = vpop.f32.mrf.mxu0  ;;  %v608_v3 = vpop.f32.mrf.mxu1 }
 0x11c   : > { %634 = vst [vmem:[%s1509_s12 + $0x80] sm:$0xff] %v498_v12  ;;  %v502_v14 = vadd.f32 %v501_v13, %v1501_v31  ;;  %v609_v15 = vadd.f32 %v608_v3, %v1503_v32 }
 0x11d   : > { %v503_v16 = vpop.f32.mrf.mxu0  ;;  %v610_v17 = vpop.f32.mrf.mxu1 }
 0x11e   : > { %636 = vst [vmem:[%s1509_s12 + $0x90] sm:$0xff] %v502_v14  ;;  %638 = vst.msk [vmem:[%s1509_s12 + $0xa0] sm:$0xff] %vm619_vm1, %v609_v15  ;;  %v504_v18 = vadd.f32 %v503_v16, %v1505_v33 }
 0x11f   : > { %v507_v19 = vpop.f32.mrf.mxu0  ;;  %v613_v20 = vpop.f32.mrf.mxu1 }
 0x120   : > { %637 = vst [vmem:[%s1509_s12 + $0x98] sm:$0xff] %v504_v18  ;;  %v508_v21 = vadd.f32 %v507_v19, %v1501_v31  ;;  %v614_v22 = vadd.f32 %v613_v20, %v1503_v32  ;;  %648 = sbr.rel (!%p1202_p3) target bundleno = 337 (0x151), region = 36 }
 0x121   : > { %v509_v23 = vpop.f32.mrf.mxu0  ;;  %v615_v24 = vpop.f32.mrf.mxu1 }
 0x122   : > { %639 = vst [vmem:[%s1509_s12 + $0xa8] sm:$0xff] %v508_v21  ;;  %641 = vst.msk [vmem:[%s1509_s12 + $0xb8] sm:$0xff] %vm619_vm1, %v614_v22  ;;  %v510_v25 = vadd.f32 %v509_v23, %v1505_v33 }
 0x124   : > { %640 = vst [vmem:[%s1509_s12 + $0xb0] sm:$0xff] %v510_v25 }
 0x125   : > { %s1714_s28 = smov (!%p652_p9, %s651_s28), 8 }
 0x126   : > { %s925_s6 = smul.u32 384, %s1714_s28 }
 0x128   : > { %p929_p10 = scmp.eq.s32.totalorder %s925_s6, 0 }
 0x129   : > { %s1578_s7 = sshrl.u32 (!%p929_p10), %s1714_s28, 3 }
 0x12a   : > { %663 = sbr.rel (%p929_p10) target bundleno = 337 (0x151), region = 40  ;;  %p930_p11 = scmp.le.s32.totalorder (!%p929_p10), %s1578_s7, 0 }
 0x12f   : > { %827 = sbr.rel (%p930_p11) target bundleno = 321 (0x141), region = 94  ;;  %s1703_s14 = smov (!%p930_p11), %s1572_s5 }
 0x130   : > { %s1704_s20 = smov (!%p930_p11), %s1509_s12  ;;  %s1587_s17 = smov (!%p930_p11), 0  }
 0x131   : > { %s1589_s8 = smov (!%p930_p11), 0  }
 0x134 LB: >> { %v676_v26 = vld [vmem:[%s1123_s20] sm:$0xff]  ;;  %v678_v27 = vld [vmem:[%s1123_s20 + $0x18] sm:$0xff]  ;;  %v680_v28 = vld [vmem:[%s1123_s20 + $0x30] sm:$0xff]  ;;  %s724_s9 = sadd.s32 1, %s1127_s17  ;;  %s670_s8 = sadd.s32 1, %s1131_s8   ;;  %s1131_s8 = sphi %s1589_s8, %s670_s8   ;;  %s1127_s17 = sphi %s1587_s17, %s1706_s17   ;;  %s1123_s20 = sphi %s1704_s20, %s729_s20   ;;  %s1119_s14 = sphi %s1703_s14, %s1705_s14  }
 0x135   : >> { %677 = vst [vmem:[%s1119_s14] sm:$0xff] %v676_v26  ;;  %679 = vst [vmem:[%s1119_s14 + $0x18] sm:$0xff] %v678_v27  ;;  %v682_v29 = vld [vmem:[%s1123_s20 + $0x48] sm:$0xff]  ;;  %v684_v30 = vld [vmem:[%s1123_s20 + $0x60] sm:$0xff]  ;;  %p725_p12 = scmp.ge.s32.totalorder %s724_s9, %s1578_s7  ;;  %p669_p13 = scmp.ge.s32.totalorder %s670_s8, %s1578_s7 }
 0x136   : >> { %681 = vst [vmem:[%s1119_s14 + $0x30] sm:$0xff] %v680_v28  ;;  %v686_v31 = vld [vmem:[%s1123_s20 + $0x78] sm:$0xff]  ;;  %683 = vst [vmem:[%s1119_s14 + $0x48] sm:$0xff] %v682_v29  ;;  %v688_v32 = vld [vmem:[%s1123_s20 + $0x90] sm:$0xff] }
 0x137   : >> { %685 = vst [vmem:[%s1119_s14 + $0x60] sm:$0xff] %v684_v30  ;;  %687 = vst [vmem:[%s1119_s14 + $0x78] sm:$0xff] %v686_v31  ;;  %v690_v33 = vld [vmem:[%s1123_s20 + $0xa8] sm:$0xff]  ;;  %v694_v35 = vld [vmem:[%s1123_s20 + $0x20] sm:$0xff]  ;;  %s1716_s9 = smov (%p725_p12, %s724_s9), 0 }
 0x138   : >> { %v692_v34 = vld [vmem:[%s1123_s20 + $0x8] sm:$0xff]  ;;  %689 = vst [vmem:[%s1119_s14 + $0x90] sm:$0xff] %v688_v32  ;;  %691 = vst [vmem:[%s1119_s14 + $0xa8] sm:$0xff] %v690_v33  ;;  %v696_v36 = vld [vmem:[%s1123_s20 + $0x38] sm:$0xff]  ;;  %s727_s10 = smul.u32 192, %s1716_s9  ;;  %s1706_s17 = smov %s1716_s9 }
 0x139   : >> { %693 = vst [vmem:[%s1119_s14 + $0x8] sm:$0xff] %v692_v34  ;;  %v698_v37 = vld [vmem:[%s1123_s20 + $0x50] sm:$0xff]  ;;  %695 = vst [vmem:[%s1119_s14 + $0x20] sm:$0xff] %v694_v35  ;;  %v700_v38 = vld [vmem:[%s1123_s20 + $0x68] sm:$0xff] }
 0x13a   : >> { %697 = vst [vmem:[%s1119_s14 + $0x38] sm:$0xff] %v696_v36  ;;  %699 = vst [vmem:[%s1119_s14 + $0x50] sm:$0xff] %v698_v37  ;;  %v702_v39 = vld [vmem:[%s1123_s20 + $0x80] sm:$0xff]  ;;  %v704_v40 = vld [vmem:[%s1123_s20 + $0x98] sm:$0xff]  ;;  %s730_s11 = scalar_lea.vmem %s1572_s5, %s727_s10  }
 0x13b   : >> { %701 = vst [vmem:[%s1119_s14 + $0x68] sm:$0xff] %v700_v38  ;;  %703 = vst [vmem:[%s1119_s14 + $0x80] sm:$0xff] %v702_v39  ;;  %v706_v41 = vld [vmem:[%s1123_s20 + $0xb0] sm:$0xff]  ;;  %v710_v43 = vld [vmem:[%s1123_s20 + $0x28] sm:$0xff] }
 0x13c   : >> { %705 = vst [vmem:[%s1119_s14 + $0x98] sm:$0xff] %v704_v40  ;;  %v708_v42 = vld [vmem:[%s1123_s20 + $0x10] sm:$0xff]  ;;  %707 = vst [vmem:[%s1119_s14 + $0xb0] sm:$0xff] %v706_v41  ;;  %v712_v44 = vld [vmem:[%s1123_s20 + $0x40] sm:$0xff]  ;;  %672 = sbr.rel (!%p669_p13) target bundleno = 308 (0x134), region = 100 }
 0x13d   : >> { %709 = vst [vmem:[%s1119_s14 + $0x10] sm:$0xff] %v708_v42  ;;  %711 = vst [vmem:[%s1119_s14 + $0x28] sm:$0xff] %v710_v43  ;;  %v714_v45 = vld [vmem:[%s1123_s20 + $0x58] sm:$0xff]  ;;  %v716_v46 = vld [vmem:[%s1123_s20 + $0x70] sm:$0xff] }
 0x13e   : >> { %713 = vst [vmem:[%s1119_s14 + $0x40] sm:$0xff] %v712_v44  ;;  %715 = vst [vmem:[%s1119_s14 + $0x58] sm:$0xff] %v714_v45  ;;  %v718_v47 = vld [vmem:[%s1123_s20 + $0x88] sm:$0xff]  ;;  %v720_v48 = vld [vmem:[%s1123_s20 + $0xa0] sm:$0xff] }
 0x13f   : >> { %717 = vst [vmem:[%s1119_s14 + $0x70] sm:$0xff] %v716_v46  ;;  %v722_v49 = vld [vmem:[%s1123_s20 + $0xb8] sm:$0xff]  ;;  %s729_s20 = scalar_lea.vmem %s1509_s12, %s727_s10 [#allocation2]   ;;  %719 = vst [vmem:[%s1119_s14 + $0x88] sm:$0xff] %v718_v47 }
 0x140   : >> { %721 = vst [vmem:[%s1119_s14 + $0xa0] sm:$0xff] %v720_v48  ;;  %723 = vst [vmem:[%s1119_s14 + $0xb8] sm:$0xff] %v722_v49  ;;  %s1705_s14 = smov %s730_s11 }
 0x141 PF: > { %s1667_s19 = sand.u32 7, %s1714_s28   ;;  %s932_s21 = smul.u32 192, %s1578_s7 }
 0x142   : > { %p934_p0 = scmp.le.s32.totalorder %s1667_s19, 0 }
 0x143   : > { %s1671_s23 = scalar_lea.vmem %s1509_s12, %s932_s21 [#allocation2]   ;;  %s1674_s24 = scalar_lea.vmem %s1572_s5, %s932_s21  }
 0x144   : > { %841 = sbr.rel (%p934_p0) target bundleno = 337 (0x151), region = 105  ;;  %s1133_s26 = smov (!%p934_p0), %s1674_s24  }
 0x145   : > { %s1137_s27 = smov (!%p934_p0), %s1671_s23   ;;  %s1141_s25 = smov (!%p934_p0), 0  }
 0x146   : > { %s1145_s29 = smov (!%p934_p0), 0  }
 0x149 LB: >> { %v747_v50 = vld [vmem:[%s1139_s27] sm:$0xff]  ;;  %v749_v51 = vld [vmem:[%s1139_s27 + $0x8] sm:$0xff]  ;;  %v751_v52 = vld [vmem:[%s1139_s27 + $0x10] sm:$0xff]  ;;  %s753_s12 = sadd.s32 1, %s1143_s25  ;;  %s741_s29 = sadd.s32 1, %s1147_s29   ;;  %s1147_s29 = sphi %s1145_s29, %s741_s29   ;;  %s1143_s25 = sphi %s1141_s25, %s1142_s25   ;;  %s1139_s27 = sphi %s1137_s27, %s758_s27   ;;  %s1135_s26 = sphi %s1133_s26, %s759_s26  }
 0x14a   : >> { %748 = vst [vmem:[%s1135_s26] sm:$0xff] %v747_v50  ;;  %750 = vst [vmem:[%s1135_s26 + $0x8] sm:$0xff] %v749_v51  ;;  %p754_p1 = scmp.ge.s32.totalorder %s753_s12, %s1667_s19  ;;  %p740_p2 = scmp.ge.s32.totalorder %s741_s29, %s1667_s19 }
 0x14b   : >> { %752 = vst [vmem:[%s1135_s26 + $0x10] sm:$0xff] %v751_v52 }
 0x14c   : >> { %s1718_s12 = smov (%p754_p1, %s753_s12), 0  ;;  %743 = sbr.rel (!%p740_p2) target bundleno = 329 (0x149), region = 111 }
 0x14d   : >> { %s756_s28 = smul.u32 24, %s1718_s12  ;;  %s1142_s25 = smov %s1718_s12  }
 0x14f   : >> { %s758_s27 = scalar_lea.vmem %s1671_s23, %s756_s28 [#allocation2]   ;;  %s759_s26 = scalar_lea.vmem %s1674_s24, %s756_s28  }
 0x151 PF: > { %s13_s16 = sadd.s32 1, %s1115_s16   ;;  %s1707_s12 = smov %s1103_s13 }
 0x152   : > { %p10_p3 = scmp.ge.s32.totalorder %s13_s16, 6   ;;  %s1708_s13 = smov %s1211_s22 }
 0x153   : > { %s1709_s14 = smov %s1111_s15  ;;  %s1710_s15 = smov %s1712_s18 }
 0x154   :  { %12 = sbr.rel (!%p10_p3) target bundleno = 3 (0x3), region = 122 }

</bundles_post_ra>
